<compile_context>
chip_gen: v6e
topology: v6e:2x2x1
jax: 0.10.0
libtpu: 0.0.40
codegen_flags: <defaults>
</compile_context>

<pallas_src>
import functools

import jax
import jax.numpy as jnp
from jax.experimental import pallas as pl
from jax.experimental.pallas import tpu as pltpu

_LANE = 128
_SUBLANE = 8
_EPS = 1e-8

_TARGET_TILE_ROWS = 4096              # 4096 x 128 f32 = 2 MiB streaming block
_MIN_GRID_STEPS = 8                   # keep >=8 blocks so v7x megacore gets >=4/core
_BUF_TILE_ROWS = 2048                 # 1 MiB blocks for the tiled stats reduction
_FUSE_BUF_BYTES = 4 * 1024 * 1024     # buffer resident in VMEM on the fused path
_FUSE_REWARD_BYTES = 4 * 1024 * 1024  # above this, prefer the 'parallel' split path
_VMEM_LIMIT = 32 * 1024 * 1024        # explicit; safe on v5e/v6e/v7x (<=64 MiB phys)


def _round_up(x, m):
    return ((x + m - 1) // m) * m


def _pick_tile_rows(rows):
    """Large (multiple-of-8) row tile, capped so the grid keeps >= _MIN_GRID_STEPS."""
    cap = max(_SUBLANE, _round_up(pl.cdiv(rows, _MIN_GRID_STEPS), _SUBLANE))
    return min(_TARGET_TILE_ROWS, cap)


def _reward_slab(rewards):
    """Flatten + zero-pad to a multiple of 8*128 -> lane/sublane-dense [rows, 128]."""
    flat = rewards.reshape(-1)
    total = int(flat.size)
    padded = _round_up(max(total, 1), _SUBLANE * _LANE)
    if padded != total:
        flat = jnp.pad(flat, (0, padded - total))
    return flat.reshape(padded // _LANE, _LANE)


def _buffer_slab(reward_buffer):
    """Zero-pad the stored rewards to an exact multiple of the stats tile."""
    flat = reward_buffer.reshape(-1)
    n = int(flat.size)
    rows0 = pl.cdiv(max(n, 1), _LANE)
    tile_b = min(_BUF_TILE_ROWS, _round_up(rows0, _SUBLANE))
    rows = _round_up(rows0, tile_b)
    padded = rows * _LANE
    if padded != n:
        flat = jnp.pad(flat, (0, padded - n))
    return flat.reshape(rows, _LANE), n, padded - n, tile_b


def _fused_kernel(buf_ref, r_ref, out_ref, mean_sc, inv_sc, *, n, pad):
    """Stats once at grid step 0 (buffer resident), streaming normalize every step."""

    @pl.when(pl.program_id(0) == 0)
    def _():
        buf = buf_ref[...].astype(jnp.float32)             # [rows_b, 128], zero-padded
        row_sum = jnp.sum(buf, axis=1, keepdims=True)      # lane reduce
        total = jnp.sum(row_sum, axis=0, keepdims=True)    # sublane reduce -> (1,1)
        mean = total / n
        # Two-pass variance; each zero-pad element contributes mean^2, removed exactly.
        centered = buf - mean
        sq_row = jnp.sum(centered * centered, axis=1, keepdims=True)
        sq_all = jnp.sum(sq_row, axis=0, keepdims=True)
        denom = n - 1 if n > 1 else 1  # TODO(synk): torch.std(ddof=1) is NaN at n==1
        var = jnp.maximum((sq_all - pad * mean * mean) / denom, 0.0)
        mean_sc[...] = mean
        inv_sc[...] = 1.0 / (jnp.sqrt(var) + _EPS)         # hoisted reciprocal

    mean = mean_sc[0, 0]
    inv = inv_sc[0, 0]
    out_ref[...] = ((r_ref[...].astype(jnp.float32) - mean) * inv).astype(out_ref.dtype)


def _stats_kernel(buf_ref, mean_ref, inv_ref, sum_sc, sq_sc, *, n):
    """Tiled one-pass sum/sumsq reduction -> mean and 1/(std+eps)."""
    step = pl.program_id(0)

    @pl.when(step == 0)
    def _():
        sum_sc[...] = jnp.zeros_like(sum_sc)
        sq_sc[...] = jnp.zeros_like(sq_sc)

    tile = buf_ref[...].astype(jnp.float32)                # zero-padded past n
    row_sum = jnp.sum(tile, axis=1, keepdims=True)
    sum_sc[...] += jnp.sum(row_sum, axis=0, keepdims=True)
    sq_row = jnp.sum(tile * tile, axis=1, keepdims=True)
    sq_sc[...] += jnp.sum(sq_row, axis=0, keepdims=True)

    @pl.when(step == pl.num_programs(0) - 1)
    def _():
        mean = sum_sc[...] / n
        denom = n - 1 if n > 1 else 1  # TODO(synk): torch.std(ddof=1) is NaN at n==1
        # One-pass variance (clamped at 0); fine unless |mean| >> std (cancellation).
        var = jnp.maximum((sq_sc[...] - n * mean * mean) / denom, 0.0)
        mean_ref[...] = mean
        inv_ref[...] = 1.0 / (jnp.sqrt(var) + _EPS)


def _normalize_kernel(mean_ref, inv_ref, r_ref, out_ref):
    """Pure streaming pass: out = (r - mean) * inv  (2 VPU ops per vreg)."""
    mean = mean_ref[0, 0]                                  # SMEM scalar read
    inv = inv_ref[0, 0]
    out_ref[...] = ((r_ref[...].astype(jnp.float32) - mean) * inv).astype(out_ref.dtype)


def _fused_call(buf2d, r2d, tile_r, n, pad):
    rows = r2d.shape[0]
    return pl.pallas_call(
        functools.partial(_fused_kernel, n=n, pad=pad),
        out_shape=jax.ShapeDtypeStruct(r2d.shape, jnp.float32),
        grid_spec=pltpu.PrefetchScalarGridSpec(
            num_scalar_prefetch=0,
            grid=(pl.cdiv(rows, tile_r),),
            in_specs=[
                pl.BlockSpec(buf2d.shape, lambda i: (0, 0)),     # resident, DMA'd once
                pl.BlockSpec((tile_r, _LANE), lambda i: (i, 0)),
            ],
            out_specs=pl.BlockSpec((tile_r, _LANE), lambda i: (i, 0)),
            scratch_shapes=[pltpu.VMEM((1, 1), jnp.float32),
                            pltpu.VMEM((1, 1), jnp.float32)],
        ),
        compiler_params=pltpu.CompilerParams(
            dimension_semantics=("arbitrary",),   # step 0 writes stats, later steps read
            vmem_limit_bytes=_VMEM_LIMIT,
        ),
    )(buf2d, r2d)


def _stats_call(buf2d, tile_b, n):
    rows_b = buf2d.shape[0]
    return pl.pallas_call(
        functools.partial(_stats_kernel, n=n),
        out_shape=(jax.ShapeDtypeStruct((1, 1), jnp.float32),
                   jax.ShapeDtypeStruct((1, 1), jnp.float32)),
        grid_spec=pltpu.PrefetchScalarGridSpec(
            num_scalar_prefetch=0,
            grid=(rows_b // tile_b,),                            # exact: padded to tile
            in_specs=[pl.BlockSpec((tile_b, _LANE), lambda i: (i, 0))],
            out_specs=(pl.BlockSpec((1, 1), lambda i: (0, 0)),
                       pl.BlockSpec((1, 1), lambda i: (0, 0))),
            scratch_shapes=[pltpu.VMEM((1, 1), jnp.float32),
                            pltpu.VMEM((1, 1), jnp.float32)],
        ),
        compiler_params=pltpu.CompilerParams(
            dimension_semantics=("arbitrary",),
            vmem_limit_bytes=_VMEM_LIMIT,
        ),
    )(buf2d)


def _normalize_call(mean, inv, r2d, tile_r):
    rows = r2d.shape[0]
    return pl.pallas_call(
        _normalize_kernel,
        out_shape=jax.ShapeDtypeStruct(r2d.shape, jnp.float32),
        grid_spec=pltpu.PrefetchScalarGridSpec(
            num_scalar_prefetch=0,
            grid=(pl.cdiv(rows, tile_r),),
            in_specs=[
                pl.BlockSpec(memory_space=pltpu.SMEM),           # mean   (sreg read)
                pl.BlockSpec(memory_space=pltpu.SMEM),           # 1/(std+eps)
                pl.BlockSpec((tile_r, _LANE), lambda i: (i, 0)),
            ],
            out_specs=pl.BlockSpec((tile_r, _LANE), lambda i: (i, 0)),
        ),
        compiler_params=pltpu.CompilerParams(
            dimension_semantics=("parallel",),                   # megacore-shardable rows
            vmem_limit_bytes=_VMEM_LIMIT,
        ),
    )(mean, inv, r2d)


def reward_normalizer_forward(reward_buffer, rewards, mode="auto"):
    """out = (rewards - mean(buffer)) / (std(buffer, unbiased) + 1e-8), f32."""
    orig_shape = rewards.shape
    total = int(rewards.size)

    r2d = _reward_slab(rewards)
    tile_r = _pick_tile_rows(r2d.shape[0])
    buf2d, n, pad, tile_b = _buffer_slab(reward_buffer)

    if mode == "auto":
        fuse = (buf2d.size * 4 <= _FUSE_BUF_BYTES
                and r2d.size * 4 <= _FUSE_REWARD_BYTES)
    else:
        fuse = mode == "fused"

    if fuse:
        out2d = _fused_call(buf2d, r2d, tile_r, n, pad)
    else:
        mean, inv = _stats_call(buf2d, tile_b, n)
        out2d = _normalize_call(mean, inv, r2d, tile_r)

    return out2d.reshape(-1)[:total].reshape(orig_shape)


if __name__ == "__main__":
    key = jax.random.PRNGKey(0)
    k_buf, k_rew = jax.random.split(key)

    capacity = 200          # not a multiple of 128: exercises the zero-padded stats path
    B, T = 16, 128          # small rewards tensor passed to forward()

    # Deterministic "history" of rewards (what .add() would have accumulated).
    reward_buffer = jax.random.normal(k_buf, (capacity,), dtype=jnp.float32) * 2.0 + 0.5
    # Incoming rewards to normalize.
    rewards = jax.random.normal(k_rew, (B, T), dtype=jnp.float32)

    # Pure-JAX reference (same semantics as the PyTorch module).
    ex = jnp.mean(reward_buffer)
    std = jnp.std(reward_buffer, ddof=1)
    ref = (rewards - ex) / (std + 1e-8)

    # Exercise both code paths (fused single-call, and tiled stats + SMEM-scalar split).
    for mode in ("fused", "split"):
        out = jax.block_until_ready(
            reward_normalizer_forward(reward_buffer, rewards, mode=mode))
        assert out.shape == rewards.shape and out.dtype == jnp.float32
        assert jnp.allclose(out, ref, atol=1e-5, rtol=1e-5), f"mismatch vs ref ({mode})"

    # Also a shape whose size is not a multiple of 128 (padded lane-dense path).
    rew_odd = jax.random.normal(k_rew, (3, 50), dtype=jnp.float32)
    ref_odd = (rew_odd - ex) / (std + 1e-8)
    out_odd = jax.block_until_ready(reward_normalizer_forward(reward_buffer, rew_odd))
    assert out_odd.shape == rew_odd.shape
    assert jnp.allclose(out_odd, ref_odd, atol=1e-5, rtol=1e-5), "mismatch (odd shape)"

    print("KERNEL_OK")
</pallas_src>

<mosaic_0001>
module attributes {stable_mosaic.version = 11 : i64} {
  func.func @_fused_kernel(%arg0: i32, %arg1: memref<8x128xf32, #tpu.memory_space<vmem>>, %arg2: memref<8x128xf32, #tpu.memory_space<vmem>>, %arg3: memref<8x128xf32, #tpu.memory_space<vmem>>, %arg4: memref<1x1xf32, #tpu.memory_space<vmem>>, %arg5: memref<1x1xf32, #tpu.memory_space<vmem>>) attributes {dimension_semantics = [#tpu.dimension_semantics<arbitrary>], iteration_bounds = array<i64: 2>, scalar_prefetch = 0 : i64, scratch_operands = 2 : i64, tpu.core_type = #tpu.core_type<tc>, window_params = [{pipeline_mode = #tpu.pipeline_mode<synchronous>, transform_indices = @transform_0, window_bounds = array<i64: 8, 128>}, {transform_indices = @transform_1, window_bounds = array<i64: 8, 128>}, {transform_indices = @transform_2, window_bounds = array<i64: 8, 128>}]} {
    %c0_i32 = arith.constant 0 : i32
    %0 = arith.cmpi eq, %arg0, %c0_i32 : i32
    %1 = arith.extui %0 : i1 to i32
    %c0_i32_0 = arith.constant 0 : i32
    %2 = arith.cmpi ne, %1, %c0_i32_0 : i32
    scf.if %2 {
      %c0_8 = arith.constant 0 : index
      %c0_9 = arith.constant 0 : index
      %13 = vector.load %arg1[%c0_8, %c0_9] : memref<8x128xf32, #tpu.memory_space<vmem>>, vector<8x128xf32>
      %cst = arith.constant dense<0.000000e+00> : vector<8xf32>
      %14 = vector.multi_reduction <add>, %13, %cst [1] : vector<8x128xf32> to vector<8xf32>
      %15 = vector.shape_cast %14 : vector<8xf32> to vector<8x1xf32>
      %cst_10 = arith.constant dense<0.000000e+00> : vector<1xf32>
      %16 = vector.multi_reduction <add>, %15, %cst_10 [0] : vector<8x1xf32> to vector<1xf32>
      %17 = vector.shape_cast %16 : vector<1xf32> to vector<1x1xf32>
      %cst_11 = arith.constant 2.000000e+02 : f32
      %18 = vector.broadcast %cst_11 : f32 to vector<1x1xf32>
      %19 = arith.divf %17, %18 : vector<1x1xf32>
      %20 = vector.broadcast %19 : vector<1x1xf32> to vector<8x128xf32>
      %21 = arith.subf %13, %20 : vector<8x128xf32>
      %22 = arith.mulf %21, %21 : vector<8x128xf32>
      %cst_12 = arith.constant dense<0.000000e+00> : vector<8xf32>
      %23 = vector.multi_reduction <add>, %22, %cst_12 [1] : vector<8x128xf32> to vector<8xf32>
      %24 = vector.shape_cast %23 : vector<8xf32> to vector<8x1xf32>
      %cst_13 = arith.constant dense<0.000000e+00> : vector<1xf32>
      %25 = vector.multi_reduction <add>, %24, %cst_13 [0] : vector<8x1xf32> to vector<1xf32>
      %26 = vector.shape_cast %25 : vector<1xf32> to vector<1x1xf32>
      %cst_14 = arith.constant 8.240000e+02 : f32
      %27 = vector.broadcast %cst_14 : f32 to vector<1x1xf32>
      %28 = arith.mulf %27, %19 : vector<1x1xf32>
      %29 = arith.mulf %28, %19 : vector<1x1xf32>
      %30 = arith.subf %26, %29 : vector<1x1xf32>
      %cst_15 = arith.constant 1.990000e+02 : f32
      %31 = vector.broadcast %cst_15 : f32 to vector<1x1xf32>
      %32 = arith.divf %30, %31 : vector<1x1xf32>
      %cst_16 = arith.constant 0.000000e+00 : f32
      %33 = vector.broadcast %cst_16 : f32 to vector<1x1xf32>
      %34 = arith.maximumf %32, %33 : vector<1x1xf32>
      %c0_17 = arith.constant 0 : index
      %c0_18 = arith.constant 0 : index
      %35 = vector.load %arg4[%c0_17, %c0_18] : memref<1x1xf32, #tpu.memory_space<vmem>>, vector<1x1xf32>
      tpu.vector_store %arg4[%c0_17, %c0_18], %19 {strides = array<i32>} : memref<1x1xf32, #tpu.memory_space<vmem>>, vector<1x1xf32>,
      %36 = math.sqrt %34 : vector<1x1xf32>
      %cst_19 = arith.constant 9.99999993E-9 : f32
      %37 = vector.broadcast %cst_19 : f32 to vector<1x1xf32>
      %38 = arith.addf %36, %37 : vector<1x1xf32>
      %cst_20 = arith.constant 1.000000e+00 : f32
      %39 = vector.broadcast %cst_20 : f32 to vector<1x1xf32>
      %40 = arith.divf %39, %38 : vector<1x1xf32>
      %c0_21 = arith.constant 0 : index
      %c0_22 = arith.constant 0 : index
      %41 = vector.load %arg5[%c0_21, %c0_22] : memref<1x1xf32, #tpu.memory_space<vmem>>, vector<1x1xf32>
      tpu.vector_store %arg5[%c0_21, %c0_22], %40 {strides = array<i32>} : memref<1x1xf32, #tpu.memory_space<vmem>>, vector<1x1xf32>,
    } else {
    }
    %c0 = arith.constant 0 : index
    %c0_1 = arith.constant 0 : index
    %3 = vector.load %arg4[%c0, %c0_1] : memref<1x1xf32, #tpu.memory_space<vmem>>, vector<1x1xf32>
    %4 = vector.extract %3[0, 0] : f32 from vector<1x1xf32>
    %c0_2 = arith.constant 0 : index
    %c0_3 = arith.constant 0 : index
    %5 = vector.load %arg5[%c0_2, %c0_3] : memref<1x1xf32, #tpu.memory_space<vmem>>, vector<1x1xf32>
    %6 = vector.extract %5[0, 0] : f32 from vector<1x1xf32>
    %c0_4 = arith.constant 0 : index
    %c0_5 = arith.constant 0 : index
    %7 = vector.load %arg2[%c0_4, %c0_5] : memref<8x128xf32, #tpu.memory_space<vmem>>, vector<8x128xf32>
    %8 = vector.broadcast %4 : f32 to vector<8x128xf32>
    %9 = arith.subf %7, %8 : vector<8x128xf32>
    %10 = vector.broadcast %6 : f32 to vector<8x128xf32>
    %11 = arith.mulf %9, %10 : vector<8x128xf32>
    %c0_6 = arith.constant 0 : index
    %c0_7 = arith.constant 0 : index
    %12 = vector.load %arg3[%c0_6, %c0_7] : memref<8x128xf32, #tpu.memory_space<vmem>>, vector<8x128xf32>
    tpu.vector_store %arg3[%c0_6, %c0_7], %11 {strides = array<i32>} : memref<8x128xf32, #tpu.memory_space<vmem>>, vector<8x128xf32>,
    return
  }
  func.func @transform_0(%arg0: i32) -> (i32, i32) {
    %c0_i32 = arith.constant 0 : i32
    %c0_i32_0 = arith.constant 0 : i32
    %c0_i32_1 = arith.constant 0 : i32
    return %c0_i32, %c0_i32_0 : i32, i32
  }
  func.func @transform_1(%arg0: i32) -> (i32, i32) {
    %c0_i32 = arith.constant 0 : i32
    %c0_i32_0 = arith.constant 0 : i32
    return %arg0, %c0_i32 : i32, i32
  }
  func.func @transform_2(%arg0: i32) -> (i32, i32) {
    %c0_i32 = arith.constant 0 : i32
    %c0_i32_0 = arith.constant 0 : i32
    return %arg0, %c0_i32 : i32, i32
  }
}

</mosaic_0001>

<bundles_post_ra>
// kernel: tpu_custom_call.1
= control target key start
LH: loop header
LB: loop body
LE: loop exit
PB: predicated region body
PF: predicated region fallthrough
CT: control target
= control target key end

     0   :  { %7 = vsyncpa [#allocation5], 0  ;;  %s722_s0 = inlined_call_operand.hbm [shape: f32[8,128], index: 0, kind: input, shape index: {}]   ;;  %s723_s1 = inlined_call_operand.hbm [shape: f32[16,128], index: 1, kind: input, shape index: {}]   ;;  %s724_s2 = inlined_call_operand.hbm [shape: f32[16,128], index: 2, kind: output, shape index: {}]  }
   0x1   :  { %8 = vsyncpa [#allocation8], 0 }
   0x2   :  { %10 = vsyncpa [#allocation8 + $0x1], 0 }
   0x3   :  { %11 = vsyncpa [#allocation6], 0 }
   0x4   :  { %13 = vsyncpa [#allocation6 + $0x1], 0  ;;  %s544_s9 = smov 0   ;;  %s546_s10 = smov 0  }
   0x5   :  { %s548_s11 = smov 0   ;;  %s550_s12 = smov 0  }
   0x6 LB: > { %s565_s13 = sadd.s32 4294967295, %s524_s12   ;;  %s322_s14 = sadd.s32 4294967294, %s524_s12   ;;  %s524_s12 = sphi %s550_s12, %s748_s12   ;;  %s520_s11 = sphi %s548_s11, %s747_s11   ;;  %s516_s10 = sphi %s546_s10, %s746_s10   ;;  %s512_s9 = sphi %s544_s9, %s745_s9  }
   0x7   : > { %p60_p0 = scmp.ne.s32.totalorder %s516_s10, %s512_s9  ;;  %p725_p1 = scmp.eq.s32.totalorder %s565_s13, 0 }
   0x8   : > { %p90_p3 = scmp.eq.s32.totalorder %s322_s14, 1  ;;  %p323_p5 = scmp.ge.s32.totalorder %s524_s12, 1 }
   0x9   : > { %p574_p4 = por %p725_p1, %p60_p0  ;;  %p97_p7 = scmp.lt.s32.totalorder %s524_s12, 3 }
   0xa   : > { %p579_p6 = por %p90_p3, %p60_p0  ;;  %s526_s18 = smov [#allocation4]  }
   0xb   : > { %s729_s15 = scalar_select %p574_p4, 1, 0 }
   0xc   : > { %s730_s16 = scalar_select %p579_p6, 1, 0 }
   0xd   : > { %p585_p9 = pnand %p323_p5, %p97_p7  ;;  %s110_s19 = sshll.u32 %s526_s18, 4  ;;  %s111_s19 = int_to_ptr.vmem [resolvable:$true] %s110_s19 }
   0xe   : > { %s593_s20 = sadd.s32 1, %s524_s12   ;;  %s47_s24 = sadd.s32 1, %s520_s11 }
   0xf   : > { %s731_s17 = scalar_select %p585_p9, 1, 0 }
  0x10   : > { %p349_p11 = pneg %p585_p9  ;;  %s44_s22 = ssub.s32 %s524_s12, %s593_s20 }
  0x11   : > { %p603_p13 = scmp.eq.s32.totalorder %s44_s22, 0  ;;  %p54_p0 = scmp.ne.s32.totalorder %s520_s11, %s516_s10 }
  0x12   : > { %p597_p12 = pnand %p349_p11, %p725_p1  ;;  %s413_s25 = scalar_lea.vmem %s111_s19, 128 }
  0x13   : > { %p414_p5 = scmp.ne.s32.totalorder %s111_s19, %s413_s25  ;;  %p421_p8 = scmp.lt.s32.totalorder %s111_s19, %s111_s19 }
  0x14   : > { %p404_p3 = pneg %p597_p12  ;;  %p422_p2 = scmp.lt.s32.totalorder %s413_s25, %s413_s25 }
  0x16   : > { %p416_p7 = pnand %p414_p5, %p404_p3  ;;  %p423_p11 = por %p422_p2, %p421_p8 }
  0x18   : > { %p417_p10 = pneg %p416_p7 }
  0x1a   : > { %p424_p1 = pnand %p423_p11, %p417_p10 }
  0x1c   : > { %427 = shalt.err (!%p424_p1)
}
  0x1d   : > { %352 = dma.hbm_to_vmem [thread:$0]  (!%p597_p12), %s722_s0, 128, %s111_s19, [#allocation5]  }
  0x1e   : > { %s620_s28 = scalar_select %p603_p13, %s520_s11, %s47_s24  }
  0x1f   : > { %p55_p1 = scmp.eq.s32.totalorder %s524_s12, 0  ;;  %p734_p2 = scmp.eq.s32.totalorder %s565_s13, 1 }
  0x20   : > { %p362_p10 = scmp.lt.s32.totalorder %s524_s12, 2  ;;  %s121_s30 = sand.u32 1, %s520_s11  }
  0x21   : > { %p628_p8 = por %p734_p2, %p54_p0  ;;  %p56_p3 = por %p55_p1, %p54_p0 }
  0x22   : > { %s326_s3 = sshll.u32 %s121_s30, 3  ;;  %s327_s4 = sshll.u32 %s524_s12, 7 }
  0x23   : > { %s735_s29 = scalar_select %p628_p8, 1, 0 }
  0x24   : > { %s641_s7 = scalar_lea.hbm %s723_s1, %s327_s4  ;;  %s125_s8 = scalar_lea.vmem [#allocation7], %s326_s3 }
  0x25   : > { %s132_s14 = sshll.u32 %s125_s8, 4  ;;  %p643_p12 = pnand %p362_p10, %p56_p3  ;;  %s133_s14 = int_to_ptr.vmem [resolvable:$true] %s132_s14 }
  0x26   : > { %s122_s19 = scalar_lea.sflag [#allocation8], %s121_s30  ;;  %s428_s21 = scalar_lea.hbm %s641_s7, 128 }
  0x27   : > { %p429_p13 = scmp.ne.s32.totalorder %s641_s7, %s428_s21  ;;  %p430_p0 = pneg %p643_p12 }
  0x28   : > { %s433_s24 = scalar_lea.hbm %s723_s1, 256  ;;  %p434_p11 = scmp.lt.s32.totalorder %s641_s7, %s723_s1 }
  0x29   : > { %p431_p5 = pnand %p430_p0, %p429_p13  ;;  %p435_p1 = scmp.lt.s32.totalorder %s433_s24, %s428_s21 }
  0x2b   : > { %p432_p7 = pneg %p431_p5  ;;  %p436_p2 = por %p435_p1, %p434_p11 }
  0x2d   : > { %p437_p10 = pnand %p436_p2, %p432_p7 }
  0x2f   : > { %440 = shalt.err (!%p437_p10)
}
  0x30   : > { %s441_s27 = scalar_lea.vmem %s133_s14, 128  ;;  %s527_s30 = smov [#allocation7]  }
  0x31   : > { %p442_p3 = scmp.ne.s32.totalorder %s133_s14, %s441_s27  ;;  %s446_s3 = sshll.u32 %s527_s30, 4  ;;  %s447_s3 = int_to_ptr.vmem [resolvable:$false] %s446_s3 }
  0x32   : > { %s448_s4 = scalar_lea.vmem %s447_s3, 256  ;;  %p449_p13 = scmp.lt.s32.totalorder %s133_s14, %s447_s3 }
  0x33   : > { %p444_p6 = pnand %p442_p3, %p430_p0  ;;  %p450_p5 = scmp.lt.s32.totalorder %s448_s4, %s441_s27 }
  0x35   : > { %p445_p8 = pneg %p444_p6  ;;  %p451_p4 = por %p450_p5, %p449_p13 }
  0x37   : > { %p452_p9 = pnand %p451_p4, %p445_p8 }
  0x39   : > { %455 = shalt.err (!%p452_p9)
}
  0x3a   : > { %356 = dma.hbm_to_vmem [thread:$0]  (!%p643_p12), %s641_s7, 128, %s133_s14, %s122_s19  }
  0x3b   : > { %p737_p7 = scmp.ne.s32.totalorder %s731_s17, 0 }
  0x3c   : > { %p738_p11 = scmp.eq.s32.totalorder (!%p737_p7), %s565_s13, 0 }
  0x3d   : > { %141 = sbr.rel (%p737_p7) target bundleno = 499 (0x1f3), region = 28 }
  0x42   : > { %499 = dma.done.wait (%p738_p11), [#allocation5], 128   ;;  %p739_p6 = pmov %p738_p11 }
  0x43   : > { %s668_s5 = sand.u32 1, %s516_s10   ;;  %p740_p4 = scmp.ne.s32.totalorder %s729_s15, 0 }
  0x44   : > { %501 = vsyncadd (%p739_p6), [#allocation5], 4294967168  ;;  %s330_s6 = sshll.u32 %s668_s5, 3  ;;  %s148_s8 = scalar_lea.sflag [#allocation8], %s668_s5 }
  0x45   : > { %s672_s18 = scalar_lea.vmem [#allocation7], %s330_s6 }
  0x46   : > { %503 = dma.done.wait (%p740_p4), %s148_s8, 128  }
  0x47   : > { %505 = vsyncadd (%p740_p4), %s148_s8, 4294967168  ;;  %s678_s17 = scalar_lea.vmem [#allocation9], %s330_s6  ;;  %p741_p9 = scmp.ne.s32.totalorder %s565_s13, 0 }
  0x49   : > { %175 = sbr.rel (%p741_p9) target bundleno = 426 (0x1aa), region = 40 }
  0x4e   : > { %v176_v0 = vld [vmem:[#allocation4] sm:$0xff]  ;;  %vm203_vm0 = vcmask 0  }
  0x4f   : > { %177 = vadd.xlane.f32.xlu0 %v176_v0 }
  0xd8   : > { %v178_v1 = vpop.xlane.xlu0 %177 }
  0xd9   : > { %v179_v2 = vrot.slane %v178_v1, 4 }
  0xdb   : > { %v180_v3 = vadd.f32 %v179_v2, %v178_v1 }
  0xdd   : > { %v181_v4 = vrot.slane %v180_v3, 2 }
  0xdf   : > { %v182_v5 = vadd.f32 %v181_v4, %v180_v3 }
  0xe1   : > { %v183_v6 = vrot.slane %v182_v5, 1 }
  0xe3   : > { %v184_v7 = vadd.f32 %v183_v6, %v182_v5 }
  0xe5   : > { %v186_v8 = vmul.f32 0.005, %v184_v7 }
  0xe7   : > { %204 = vst.msk [vmem:[#allocation2] sm:$0x1] %vm203_vm0, %v186_v8  ;;  %v187_v9 = vsub.f32 %v176_v0, %v186_v8  ;;  %v197_v15 = vmul.f32 824.0, %v186_v8 }
  0xe9   : > { %v188_v10 = vmul.f32 %v187_v9, %v187_v9  ;;  %v198_v18 = vmul.f32 %v197_v15, %v186_v8 }
  0xeb   : > { %189 = vadd.xlane.f32.xlu0 %v188_v10 }
 0x174   : > { %v190_v11 = vpop.xlane.xlu0 %189 }
 0x175   : > { %v191_v12 = vrot.slane %v190_v11, 4 }
 0x177   : > { %v192_v13 = vadd.f32 %v191_v12, %v190_v11 }
 0x179   : > { %v193_v14 = vrot.slane %v192_v13, 2 }
 0x17b   : > { %v194_v16 = vadd.f32 %v193_v14, %v192_v13 }
 0x17d   : > { %v195_v17 = vrot.slane %v194_v16, 1 }
 0x17f   : > { %v196_v19 = vadd.f32 %v195_v17, %v194_v16 }
 0x181   : > { %v199_v20 = vsub.f32 %v196_v19, %v198_v18 }
 0x183   : > { %v201_v21 = vmul.f32 0.0050251256, %v199_v20 }
 0x185   : > { %v202_v22 = vmax.f32 %v201_v21, 0.0 }
 0x187   : > { %398 = vrsqrt.f32 %v202_v22  ;;  %vm207_vm1 = vcmp.eq.f32.partialorder %v202_v22, inf  ;;  %v210_v25 = vand.u32 2147483648, %v202_v22  ;;  %vm209_vm2 = vcmp.eq.f32.partialorder %v202_v22, 0.0 }
 0x194   : > { %v399_v23 = vpop.eup %398 }
 0x195   : > { %v206_v24 = vmul.f32 %v399_v23, %v202_v22 }
 0x197   : > { %v208_v26 = vsel %vm207_vm1, %v202_v22, %v206_v24 }
 0x198   : > { %v211_v27 = vsel %vm209_vm2, %v210_v25, %v208_v26 }
 0x199   : > { %v212_v28 = vadd.f32 1e-08, %v211_v27 }
 0x19b   : > { %400 = vrcp.f32 %v212_v28 }
 0x1a8   : > { %v401_v29 = vpop.eup %400 }
 0x1a9   : > { %215 = vst.msk [vmem:[#allocation3] sm:$0x1] %vm203_vm0, %v401_v29 }
 0x1aa PF: > { %v216_v30 = vld [vmem:[#allocation2] sm:$0x1]  ;;  %v220_v32 = vld [vmem:[%s672_s18] sm:$0xff]  ;;  %s334_s7 = sshll.u32 %s565_s13, 7  ;;  %s240_s19 = sshll.u32 %s678_s17, 4  ;;  %s241_s19 = int_to_ptr.vmem [resolvable:$true] %s240_s19 }
 0x1ab   : > { %337 = vpush %v216_v30  ;;  %s238_s23 = scalar_lea.hbm %s724_s2, %s334_s7  ;;  %s227_s24 = scalar_lea.sflag [#allocation6], %s668_s5 }
 0x1ac   : > { %s456_s25 = scalar_lea.vmem %s241_s19, 128  ;;  %p742_p12 = scmp.ne.s32.totalorder %s735_s29, 0 }
 0x1ad   : > { %p457_p8 = scmp.ne.s32.totalorder %s241_s19, %s456_s25  ;;  %s528_s26 = smov [#allocation9]  }
 0x1ae   : > { %s460_s13 = sshll.u32 %s528_s26, 4  ;;  %s461_s13 = int_to_ptr.vmem [resolvable:$false] %s460_s13 }
 0x1af   : > { %p458_p0 = pnand %p457_p8, %p742_p12  ;;  %s462_s27 = scalar_lea.vmem %s461_s13, 256 }
 0x1b0   : > { %v218_v31 = vld [vmem:[#allocation3] sm:$0x1]  ;;  %p463_p2 = scmp.lt.s32.totalorder %s241_s19, %s461_s13  ;;  %p464_p10 = scmp.lt.s32.totalorder %s462_s27, %s456_s25 }
 0x1b1   : > { %339 = vpush %v218_v31  ;;  %p459_p1 = pneg %p458_p0 }
 0x1b2   : > { %p465_p3 = por %p464_p10, %p463_p2 }
 0x1b4   : > { %p466_p13 = pnand %p465_p3, %p459_p1 }
 0x1dc   : > { %s338_s15 = spop %337 }
 0x1dd   : > { %v221_v33 = vstv %s338_s15 }
 0x1de   : > { %v222_v34 = vsub.f32 %v220_v32, %v221_v33 }
 0x1e2   : > { %s340_s14 = spop %339 }
 0x1e3   : > { %v223_v35 = vstv %s340_s14 }
 0x1e4   : > { %v224_v36 = vmul.f32 %v223_v35, %v222_v34 }
 0x1e6   : > { %225 = vst [vmem:[%s678_s17] sm:$0xff] %v224_v36 }
 0x1e7   : > { %469 = shalt.err (!%p466_p13)
}
 0x1e8   : > { %s470_s30 = scalar_lea.hbm %s238_s23, 128  ;;  %s474_s5 = scalar_lea.hbm %s724_s2, 256 }
 0x1e9   : > { %p471_p5 = scmp.ne.s32.totalorder %s238_s23, %s470_s30  ;;  %p475_p6 = scmp.lt.s32.totalorder %s238_s23, %s724_s2 }
 0x1ea   : > { %p476_p4 = scmp.lt.s32.totalorder %s474_s5, %s470_s30 }
 0x1eb   : > { %p472_p7 = pnand %p471_p5, %p742_p12 }
 0x1ec   : > { %p477_p9 = por %p476_p4, %p475_p6 }
 0x1ed   : > { %p473_p11 = pneg %p472_p7 }
 0x1ef   : > { %p478_p8 = pnand %p477_p9, %p473_p11 }
 0x1f1   : > { %481 = shalt.err (!%p478_p8)
}
 0x1f2   : > { %347 = dma.vmem_to_hbm [thread:$0]  (%p742_p12), %s241_s19, 128, %s238_s23, %s227_s24  }
 0x1f3 PF: > { %s252_s18 = sand.u32 1, %s512_s9   ;;  %p743_p0 = scmp.ne.s32.totalorder %s730_s16, 0 }
 0x1f4   : > { %p744_p1 = scmp.ge.s32.totalorder %s524_s12, 2  ;;  %s253_s17 = scalar_lea.sflag [#allocation6], %s252_s18 }
 0x1f6   : > { %p358_p2 = pnand %p744_p1, %p743_p0 }
 0x1f8   : > { %p359_p10 = pneg %p358_p2 }
 0x1fa   : > { %507 = dma.done.wait (%p359_p10), %s253_s17, 128  }
 0x1fb   : > { %509 = vsyncadd (%p359_p10), %s253_s17, 4294967168  ;;  %p16_p3 = scmp.ge.s32.totalorder %s593_s20, 4   ;;  %s745_s9 = smov %s516_s10 }
 0x1fc   : > { %s746_s10 = smov %s520_s11  ;;  %s747_s11 = smov %s620_s28 }
 0x1fd   : > { %s748_s12 = smov %s593_s20  ;;  %18 = sbr.rel (!%p16_p3) target bundleno = 6 (0x6), region = 82 }
 0x202   :  { %258 = vsyncpa [#allocation5], 1 }
 0x203   :  { %260 = vsyncpa [#allocation5 + $0x1], 1 }
 0x204   :  { %261 = vsyncpa [#allocation8], 1 }
 0x205   :  { %263 = vsyncpa [#allocation8 + $0x1], 1 }
 0x206   :  { %264 = vsyncpa [#allocation6], 1 }
 0x207   :  { %266 = vsyncpa [#allocation6 + $0x1], 1 }

</bundles_post_ra>
